<compile_context>
chip_gen: v5e
topology: v5e:2x2
jax: 0.10.0
libtpu: 0.0.40
codegen_flags: <defaults>
</compile_context>

<pallas_src>
import jax
import jax.numpy as jnp
from jax.experimental import pallas as pl
from jax.experimental.pallas import tpu as pltpu

# ----------------------------- model dims -----------------------------------
B, NCAM, C, H, W = 2, 2, 4, 16, 16        # small synthetic shapes
HW = H * W
BN = B * NCAM
D = 32                                     # hidden / BEV feature dim
N_CLS, N_CRD, N_SEG, N_PROTO = 8, 8, 16, 32
HEAD_WIDTHS = (N_CLS, N_CRD, N_SEG, N_PROTO, D)   # cls, crd, seg, proto, feat
OUT_W = sum(HEAD_WIDTHS)                   # 96: multiple of 8, lives on sublanes


# ----------------------------- Pallas kernel --------------------------------
def _bevformer_kernel(tok_ref, cam_ref, w_img_t_ref, b_img_ref,
                      w_heads_t_ref, b_heads_ref, out_ref):
    """One grid step == one camera (HW tokens), channels-on-sublane layout.

    tok_ref:       [1, C, HW]     native-NCHW image block (HW lane-dense)
    cam_ref:       [1, D, 1]      per-camera lidar2img embedding column
    w_img_t_ref:   [D, C]         encoder projection (transposed), resident
    b_img_ref:     [D, 1]
    w_heads_t_ref: [OUT_W, D]     [w_cls|w_crd|w_seg|w_pro|I_D]^T, resident
    b_heads_ref:   [OUT_W, 1]
    out_ref:       [1, OUT_W, HW] fused head outputs (no pad columns)
    """
    tok = tok_ref[0]                                   # [C, HW]
    cam = cam_ref[0]                                   # [D, 1] (lane-broadcasts)

    # Synthetic encoder: channel projection (+bias, ReLU) + camera embedding.
    # K = C = 4 contraction is latency-only on the MXU; negligible here.
    img = jnp.dot(w_img_t_ref[...], tok,
                  preferred_element_type=jnp.float32)                  # [D, HW]
    feat = jnp.maximum(img + b_img_ref[...], 0.0) + cam                # [D, HW]

    # Synthetic decoder: all four heads + identity feature passthrough fused
    # into one matmul; output is lane-dense [OUT_W, HW].
    out_ref[0] = (jnp.dot(w_heads_t_ref[...], feat,
                          preferred_element_type=jnp.float32)
                  + b_heads_ref[...])


# ----------------------------- parameters ------------------------------------
def init_params(key):
    """Deterministic parameter init (shapes implied by the synthetic arch)."""
    ks = jax.random.split(key, 12)
    def w(k, shape, scale=0.1):
        return jax.random.normal(k, shape, jnp.float32) * scale
    return {
        "w_img": w(ks[0], (C, D)),       "b_img": w(ks[6],  (1, D)),
        "w_cam": w(ks[1], (16, D)),      "b_cam": w(ks[7],  (1, D)),
        "w_cls": w(ks[2], (D, N_CLS)),   "b_cls": w(ks[8],  (1, N_CLS)),
        "w_crd": w(ks[3], (D, N_CRD)),   "b_crd": w(ks[9],  (1, N_CRD)),
        "w_seg": w(ks[4], (D, N_SEG)),   "b_seg": w(ks[10], (1, N_SEG)),
        "w_pro": w(ks[5], (D, N_PROTO)), "b_pro": w(ks[11], (1, N_PROTO)),
    }


def _fused_head_weights(params):
    """Concatenate head weights/biases + identity feat-passthrough; transpose
    so heads live on the sublane axis (OUT_W=96, no zero-pad columns)."""
    eye = jnp.eye(D, dtype=jnp.float32)
    w = jnp.concatenate([params["w_cls"], params["w_crd"], params["w_seg"],
                         params["w_pro"], eye], axis=1)                  # [D, 96]
    b = jnp.concatenate([params["b_cls"], params["b_crd"], params["b_seg"],
                         params["b_pro"], jnp.zeros((1, D), jnp.float32)],
                        axis=1)                                          # [1, 96]
    return w.T, b.reshape(-1, 1)                                         # [96,D],[96,1]


# ----------------------------- wrapper ---------------------------------------
def bevformer_forward(list_leveled_images, spat_lidar2img_trans, params):
    """Mirrors BEVFormer.forward: encoder on last image level + decoder heads.

    Returns (cls, crd, segments, proto, last_layer_features), each
    [B, Ncam*H*W, head_dim].
    """
    # The decoder consumes tmp_out[-1] in the reference forward -> last level.
    imgs = list_leveled_images[-1]                          # [B, Ncam, C, H, W]
    b, ncam, c, h, w = imgs.shape
    hw = h * w
    bn = b * ncam

    # Native NCHW kept: [BN, C, HW] is a pure reshape (no HBM-round-trip
    # transpose); HW is lane-dense, C=4 pads 4->8 sublanes (not 4->128 lanes).
    tok = imgs.reshape(bn, c, hw).astype(jnp.float32)

    # Camera-transform embedding: tiny [BN,16]x[16,D] matmul stays in the
    # wrapper; passed as a [BN, D, 1] per-camera column selected by the grid
    # index_map (NOT materialised to a [M, D] broadcast stream).
    lidar = spat_lidar2img_trans.reshape(bn, 16).astype(jnp.float32)
    cam_emb = jnp.maximum(lidar @ params["w_cam"] + params["b_cam"], 0.0)  # [BN, D]
    cam_col = cam_emb.reshape(bn, D, 1)

    w_heads_t, b_heads_t = _fused_head_weights(params)      # [OUT_W, D], [OUT_W, 1]
    w_img_t = params["w_img"].T                              # [D, C]
    b_img_t = params["b_img"].reshape(D, 1)                  # [D, 1]

    flops = 2 * bn * hw * (D * c + OUT_W * D)
    bytes_accessed = 4 * (tok.size + cam_col.size + w_img_t.size + b_img_t.size
                          + w_heads_t.size + b_heads_t.size + bn * OUT_W * hw)

    out = pl.pallas_call(
        _bevformer_kernel,
        out_shape=jax.ShapeDtypeStruct((bn, OUT_W, hw), jnp.float32),
        grid=(bn,),
        in_specs=[
            pl.BlockSpec((1, c, hw), lambda i: (i, 0, 0)),   # tokens (per camera)
            pl.BlockSpec((1, D, 1), lambda i: (i, 0, 0)),    # cam column (per camera)
            pl.BlockSpec((D, c), lambda i: (0, 0)),          # w_img^T   (resident)
            pl.BlockSpec((D, 1), lambda i: (0, 0)),          # b_img     (resident)
            pl.BlockSpec((OUT_W, D), lambda i: (0, 0)),      # fused heads^T (resident)
            pl.BlockSpec((OUT_W, 1), lambda i: (0, 0)),      # fused biases  (resident)
        ],
        out_specs=pl.BlockSpec((1, OUT_W, hw), lambda i: (i, 0, 0)),
        compiler_params=pltpu.CompilerParams(
            dimension_semantics=("parallel",)),              # megacore on v7x
        cost_estimate=pl.CostEstimate(flops=flops, transcendentals=0,
                                      bytes_accessed=bytes_accessed),
    )(tok, cam_col, w_img_t, b_img_t, w_heads_t, b_heads_t)

    # Slice the fused sublane-axis slab into the five heads and reshape to the
    # reference [B, Ncam*H*W, head_dim] (BEV query-major) convention.
    outs = []
    off = 0
    for width in HEAD_WIDTHS:
        head = out[:, off:off + width, :]                    # [BN, width, HW]
        outs.append(jnp.transpose(head, (0, 2, 1)).reshape(b, ncam * hw, width))
        off += width
    cls, crd, segments, proto, last_layer_features = outs
    return cls, crd, segments, proto, last_layer_features


# ----------------------------- reference (pure JAX) ---------------------------
def _reference(list_leveled_images, lidar, p):
    imgs = list_leveled_images[-1]
    b, ncam, c, h, w = imgs.shape
    tok = jnp.transpose(imgs, (0, 1, 3, 4, 2)).reshape(b * ncam, h * w, c)
    lid = lidar.reshape(b * ncam, 1, 16)
    img_feat = jnp.maximum(tok @ p["w_img"] + p["b_img"], 0.0)
    cam_emb = jnp.maximum(lid @ p["w_cam"] + p["b_cam"], 0.0)
    feat = img_feat + cam_emb
    outs = (feat @ p["w_cls"] + p["b_cls"], feat @ p["w_crd"] + p["b_crd"],
            feat @ p["w_seg"] + p["b_seg"], feat @ p["w_pro"] + p["b_pro"], feat)
    return tuple(o.reshape(b, ncam * h * w, o.shape[-1]) for o in outs)


# ----------------------------- main -------------------------------------------
if __name__ == "__main__":
    key = jax.random.PRNGKey(0)
    k_img, k_lidar, k_param = jax.random.split(key, 3)

    # inputs mirroring the PyTorch forward's `inputs` dict
    list_leveled_images = [
        jax.random.normal(k_img, (B, NCAM, C, H, W), jnp.float32)  # single FPN level
    ]
    spat_lidar2img_trans = jax.random.normal(k_lidar, (B, NCAM, 4, 4), jnp.float32)

    params = init_params(k_param)

    cls, crd, segments, proto, last_layer_features = bevformer_forward(
        list_leveled_images, spat_lidar2img_trans, params)
    jax.block_until_ready((cls, crd, segments, proto, last_layer_features))

    # correctness check against pure-JAX reference
    ref = _reference(list_leveled_images, spat_lidar2img_trans, params)
    for got, want in zip((cls, crd, segments, proto, last_layer_features), ref):
        assert got.shape == want.shape and got.dtype == want.dtype
        assert jnp.allclose(got, want, atol=1e-4, rtol=1e-4)

    print("KERNEL_OK")
</pallas_src>

<mosaic_0001>
module attributes {stable_mosaic.version = 11 : i64} {
  func.func @_bevformer_kernel(%arg0: i32, %arg1: memref<1x4x256xf32, #tpu.memory_space<vmem>>, %arg2: memref<1x32x1xf32, #tpu.memory_space<vmem>>, %arg3: memref<32x4xf32, #tpu.memory_space<vmem>>, %arg4: memref<32x1xf32, #tpu.memory_space<vmem>>, %arg5: memref<96x32xf32, #tpu.memory_space<vmem>>, %arg6: memref<96x1xf32, #tpu.memory_space<vmem>>, %arg7: memref<1x96x256xf32, #tpu.memory_space<vmem>>) attributes {dimension_semantics = [#tpu.dimension_semantics<parallel>], iteration_bounds = array<i64: 4>, scalar_prefetch = 0 : i64, scratch_operands = 0 : i64, tpu.core_type = #tpu.core_type<tc>, window_params = [{transform_indices = @transform_0, window_bounds = array<i64: 1, 4, 256>}, {transform_indices = @transform_1, window_bounds = array<i64: 1, 32, 1>}, {pipeline_mode = #tpu.pipeline_mode<synchronous>, transform_indices = @transform_2, window_bounds = array<i64: 32, 4>}, {pipeline_mode = #tpu.pipeline_mode<synchronous>, transform_indices = @transform_3, window_bounds = array<i64: 32, 1>}, {pipeline_mode = #tpu.pipeline_mode<synchronous>, transform_indices = @transform_4, window_bounds = array<i64: 96, 32>}, {pipeline_mode = #tpu.pipeline_mode<synchronous>, transform_indices = @transform_5, window_bounds = array<i64: 96, 1>}, {transform_indices = @transform_6, window_bounds = array<i64: 1, 96, 256>}]} {
    %c0 = arith.constant 0 : index
    %c0_0 = arith.constant 0 : index
    %c0_1 = arith.constant 0 : index
    %0 = vector.load %arg1[%c0, %c0_0, %c0_1] : memref<1x4x256xf32, #tpu.memory_space<vmem>>, vector<1x4x256xf32>
    %1 = vector.shape_cast %0 : vector<1x4x256xf32> to vector<4x256xf32>
    %c0_2 = arith.constant 0 : index
    %c0_3 = arith.constant 0 : index
    %c0_4 = arith.constant 0 : index
    %2 = vector.load %arg2[%c0_2, %c0_3, %c0_4] : memref<1x32x1xf32, #tpu.memory_space<vmem>>, vector<1x32x1xf32>
    %3 = vector.shape_cast %2 : vector<1x32x1xf32> to vector<32x1xf32>
    %c0_5 = arith.constant 0 : index
    %c0_6 = arith.constant 0 : index
    %4 = vector.load %arg3[%c0_5, %c0_6] : memref<32x4xf32, #tpu.memory_space<vmem>>, vector<32x4xf32>
    %cst = arith.constant dense<0.000000e+00> : vector<32x256xf32>
    %5 = tpu.matmul %4, %1, %cst {dimension_numbers = #tpu.dot_dimension_numbers<[1], [0], [0], [1], [0, 0, 1, 1], [], []>} : vector<32x4xf32>, vector<4x256xf32>, vector<32x256xf32> -> vector<32x256xf32>
    %c0_7 = arith.constant 0 : index
    %c0_8 = arith.constant 0 : index
    %6 = vector.load %arg4[%c0_7, %c0_8] : memref<32x1xf32, #tpu.memory_space<vmem>>, vector<32x1xf32>
    %7 = vector.broadcast %6 : vector<32x1xf32> to vector<32x256xf32>
    %8 = arith.addf %5, %7 : vector<32x256xf32>
    %cst_9 = arith.constant 0.000000e+00 : f32
    %9 = vector.broadcast %cst_9 : f32 to vector<32x256xf32>
    %10 = arith.maximumf %8, %9 : vector<32x256xf32>
    %11 = vector.broadcast %3 : vector<32x1xf32> to vector<32x256xf32>
    %12 = arith.addf %10, %11 : vector<32x256xf32>
    %c0_10 = arith.constant 0 : index
    %c0_11 = arith.constant 0 : index
    %13 = vector.load %arg5[%c0_10, %c0_11] : memref<96x32xf32, #tpu.memory_space<vmem>>, vector<96x32xf32>
    %cst_12 = arith.constant dense<0.000000e+00> : vector<96x256xf32>
    %14 = tpu.matmul %13, %12, %cst_12 {dimension_numbers = #tpu.dot_dimension_numbers<[1], [0], [0], [1], [0, 0, 1, 1], [], []>} : vector<96x32xf32>, vector<32x256xf32>, vector<96x256xf32> -> vector<96x256xf32>
    %c0_13 = arith.constant 0 : index
    %c0_14 = arith.constant 0 : index
    %15 = vector.load %arg6[%c0_13, %c0_14] : memref<96x1xf32, #tpu.memory_space<vmem>>, vector<96x1xf32>
    %16 = vector.broadcast %15 : vector<96x1xf32> to vector<96x256xf32>
    %17 = arith.addf %14, %16 : vector<96x256xf32>
    %c0_15 = arith.constant 0 : index
    %c0_16 = arith.constant 0 : index
    %c0_17 = arith.constant 0 : index
    %18 = vector.load %arg7[%c0_15, %c0_16, %c0_17] : memref<1x96x256xf32, #tpu.memory_space<vmem>>, vector<1x96x256xf32>
    %19 = vector.shape_cast %18 : vector<1x96x256xf32> to vector<96x256xf32>
    %20 = vector.shape_cast %17 : vector<96x256xf32> to vector<1x96x256xf32>
    tpu.vector_store %arg7[%c0_15, %c0_16, %c0_17], %20 {strides = array<i32>} : memref<1x96x256xf32, #tpu.memory_space<vmem>>, vector<1x96x256xf32>,
    return
  }
  func.func @transform_0(%arg0: i32) -> (i32, i32, i32) {
    %c0_i32 = arith.constant 0 : i32
    %c0_i32_0 = arith.constant 0 : i32
    %c0_i32_1 = arith.constant 0 : i32
    return %arg0, %c0_i32, %c0_i32_0 : i32, i32, i32
  }
  func.func @transform_1(%arg0: i32) -> (i32, i32, i32) {
    %c0_i32 = arith.constant 0 : i32
    %c0_i32_0 = arith.constant 0 : i32
    %c0_i32_1 = arith.constant 0 : i32
    return %arg0, %c0_i32, %c0_i32_0 : i32, i32, i32
  }
  func.func @transform_2(%arg0: i32) -> (i32, i32) {
    %c0_i32 = arith.constant 0 : i32
    %c0_i32_0 = arith.constant 0 : i32
    %c0_i32_1 = arith.constant 0 : i32
    return %c0_i32, %c0_i32_0 : i32, i32
  }
  func.func @transform_3(%arg0: i32) -> (i32, i32) {
    %c0_i32 = arith.constant 0 : i32
    %c0_i32_0 = arith.constant 0 : i32
    %c0_i32_1 = arith.constant 0 : i32
    return %c0_i32, %c0_i32_0 : i32, i32
  }
  func.func @transform_4(%arg0: i32) -> (i32, i32) {
    %c0_i32 = arith.constant 0 : i32
    %c0_i32_0 = arith.constant 0 : i32
    %c0_i32_1 = arith.constant 0 : i32
    return %c0_i32, %c0_i32_0 : i32, i32
  }
  func.func @transform_5(%arg0: i32) -> (i32, i32) {
    %c0_i32 = arith.constant 0 : i32
    %c0_i32_0 = arith.constant 0 : i32
    %c0_i32_1 = arith.constant 0 : i32
    return %c0_i32, %c0_i32_0 : i32, i32
  }
  func.func @transform_6(%arg0: i32) -> (i32, i32, i32) {
    %c0_i32 = arith.constant 0 : i32
    %c0_i32_0 = arith.constant 0 : i32
    %c0_i32_1 = arith.constant 0 : i32
    return %arg0, %c0_i32, %c0_i32_0 : i32, i32, i32
  }
}

</mosaic_0001>

<bundles_post_ra>
// kernel: tpu_custom_call.1
= control target key start
LH: loop header
LB: loop body
LE: loop exit
PB: predicated region body
PF: predicated region fallthrough
CT: control target
= control target key end

     0   :  { %11 = vsyncpa [#allocation3], 0  ;;  %s1211_s0 = inlined_call_operand.vmem [shape: f32[4,4,256], index: 0, kind: input, shape index: {}]   ;;  %s1212_s1 = inlined_call_operand.vmem [shape: f32[4,32,1], index: 1, kind: input, shape index: {}]   ;;  %s1213_s2 = inlined_call_operand.vmem [shape: f32[32,4], index: 2, kind: input, shape index: {}]   ;;  %s1214_s3 = inlined_call_operand.vmem [shape: f32[32,1], index: 3, kind: input, shape index: {}]   ;;  %s1215_s4 = inlined_call_operand.vmem [shape: f32[96,32], index: 4, kind: input, shape index: {}]   ;;  %s1216_s5 = inlined_call_operand.vmem [shape: f32[96,1], index: 5, kind: input, shape index: {}]   ;;  %s1217_s6 = inlined_call_operand.hbm [shape: f32[4,96,256], index: 6, kind: output, shape index: {}]  }
   0x1   :  { %13 = vsyncpa [#allocation3 + $0x1], 0  ;;  %s964_s21 = smov 0   ;;  %s966_s22 = smov 0  }
   0x2   :  { %s968_s23 = smov 0   ;;  %s970_s24 = smov 0  }
   0x3 LB: > { %s985_s25 = sadd.s32 4294967295, %s924_s24   ;;  %s760_s26 = sadd.s32 4294967294, %s924_s24   ;;  %s924_s24 = sphi %s970_s24, %s1223_s24   ;;  %s920_s23 = sphi %s968_s23, %s1222_s23   ;;  %s916_s22 = sphi %s966_s22, %s1221_s22   ;;  %s912_s21 = sphi %s964_s21, %s1220_s21  }
   0x4   : > { %s989_s27 = sadd.s32 1, %s924_s24   ;;  %s162_s28 = sadd.s32 1, %s920_s23 }
   0x5   : > { %s159_s29 = ssub.s32 %s924_s24, %s989_s27  ;;  %p172_p0 = scmp.ne.s32.totalorder %s920_s23, %s916_s22 }
   0x6   : > { %p160_p1 = scmp.eq.s32.totalorder %s159_s29, 0  ;;  %p173_p2 = scmp.eq.s32.totalorder %s985_s25, 3 }
   0x7   : > { %p178_p3 = scmp.ne.s32.totalorder %s916_s22, %s912_s21  ;;  %p179_p4 = scmp.eq.s32.totalorder %s760_s26, 3 }
   0x8   : > { %s1000_s30 = scalar_select %p160_p1, %s920_s23, %s162_s28  }
   0x9   : > { %p1002_p5 = por %p173_p2, %p172_p0  ;;  %p1006_p6 = por %p179_p4, %p178_p3 }
   0xa   : > { %p763_p7 = scmp.ge.s32.totalorder %s924_s24, 1  ;;  %p225_p8 = scmp.lt.s32.totalorder %s924_s24, 5 }
   0xc   : > { %p226_p9 = pnand %p763_p7, %p225_p8 }
   0xd   : > { %p260_p10 = scmp.lt.s32.totalorder (!%p226_p9), %s985_s25, 3  ;;  %s257_s28 = sand.u32 (!%p226_p9), 1, %s916_s22  }
   0xe   : > { %229 = sbr.rel (%p226_p9) target bundleno = 392 (0x188), region = 44 }
   0xf   : > { %s816_s10 = smul.u32 (!%p226_p9), 192, %s985_s25 }
  0x13   : > { %v282_v0 = vld [vmem:[%s1214_s3 + $0x18] sm:$0xff]  ;;  %v280_v1 = vld [vmem:[%s1214_s3 + $0x8] sm:$0xff]  ;;  %v926_v2 = vmov 0   ;;  %s261_s13 = scalar_select %p260_p10, %s985_s25, 3  ;;  %v279_v3 = vld [vmem:[%s1214_s3] sm:$0xff]  ;;  %vm320_vm0 = vcmask 1043456  }
  0x14   : > { %860 = vset.pattern.permute.xlu1 %v926_v2  ;;  %859 = vset.pattern.permute.xlu0 %v926_v2  ;;  %v281_v5 = vld [vmem:[%s1214_s3 + $0x10] sm:$0xff]  ;;  %v275_v8 = vld [vmem:[%s1213_s2] sm:$0xff]  ;;  %vm307_vm1 = vcmask 31744   ;;  %v276_v14 = vld [vmem:[%s1213_s2 + $0x8] sm:$0xff]  ;;  %vm503_vm2 = vcmask 261120   ;;  %s671_s25 = scalar_lea.sflag [#allocation3], %s257_s28 }
  0x15   : > { %300 = vperm.xlu0 %859, %v282_v0   ;;  %290 = vperm.xlu1 %860, %v280_v1   ;;  %s806_s16 = sshll.u32 %s261_s13, 5  ;;  %s805_s17 = sshll.u32 %s261_s13, 3  ;;  %v431_v13 = vld [vmem:[%s1216_s5] sm:$0xff]  ;;  %v432_v15 = vld [vmem:[%s1216_s5 + $0x8] sm:$0xff]  ;;  %v433_v16 = vld [vmem:[%s1216_s5 + $0x10] sm:$0xff] }
  0x16   : > { %861 = vset.pattern.permute.xlu2 %v926_v2  ;;  %s269_s20 = scalar_lea.vmem %s1212_s1, %s806_s16  ;;  %s264_s29 = scalar_lea.vmem %s1211_s0, %s805_s17  ;;  %v434_v17 = vld [vmem:[%s1216_s5 + $0x18] sm:$0xff]  ;;  %v277_v18 = vld [vmem:[%s1213_s2 + $0x10] sm:$0xff]  ;;  %v435_v19 = vld [vmem:[%s1216_s5 + $0x20] sm:$0xff] }
  0x17   : > { %285 = vperm.xlu2 %861, %v279_v3   ;;  %v270_v4 = vld [vmem:[%s264_s29] sm:$0xff]  ;;  %v274_v6 = vld [vmem:[%s269_s20 + $0x18] sm:$0xff]  ;;  %v273_v7 = vld [vmem:[%s269_s20 + $0x10] sm:$0xff]  ;;  %s815_s29 = smul.u32 192, %s257_s28  ;;  %s682_s13 = scalar_lea.hbm %s1217_s6, %s816_s10 }
  0x18   : > { %304 = vst [vmem:[#allocation1] ss:$2 sm:$0xff] %v270_v4  ;;  %v272_v11 = vld [vmem:[%s269_s20 + $0x8] sm:$0xff]  ;;  %v271_v12 = vld [vmem:[%s269_s20] sm:$0xff]  ;;  %v437_v21 = vld [vmem:[%s1216_s5 + $0x30] sm:$0xff]  ;;  %s685_s15 = sshll.u32 %s682_s13, 4  ;;  %s686_s15 = int_to_ptr.hbm [resolvable:$true] %s685_s15 }
  0x19   : > { %v436_v20 = vld [vmem:[%s1216_s5 + $0x28] sm:$0xff]  ;;  %v278_v22 = vld [vmem:[%s1213_s2 + $0x18] sm:$0xff]  ;;  %v439_v24 = vld [vmem:[%s1216_s5 + $0x40] sm:$0xff]  ;;  %s1151_s9 = scalar_lea.vmem [#allocation2], %s815_s29  ;;  %s876_s16 = sshra.s32 %s686_s15, 4  ;;  %s877_s16 = int_to_ptr.hbm [resolvable:$true] %s876_s16 }
  0x1a   : > { %v438_v23 = vld [vmem:[%s1216_s5 + $0x38] sm:$0xff]  ;;  %v440_v25 = vld [vmem:[%s1216_s5 + $0x48] sm:$0xff]  ;;  %v441_v26 = vld [vmem:[%s1216_s5 + $0x50] sm:$0xff]  ;;  %s683_s14 = sshll.u32 %s1151_s9, 4  ;;  %s878_s17 = scalar_lea.hbm %s877_s16, 192  ;;  %s684_s14 = int_to_ptr.vmem [resolvable:$true] %s683_s14 }
  0x1b   : > { %v442_v27 = vld [vmem:[%s1216_s5 + $0x58] sm:$0xff]  ;;  %v419_v4 = vld [vmem:[%s1215_s4] sm:$0xff]  ;;  %p879_p11 = scmp.ne.s32.totalorder %s877_s16, %s878_s17  ;;  %s882_s20 = scalar_lea.hbm %s1217_s6, 768 }
  0x1c   : > { %p883_p0 = scmp.lt.s32.totalorder %s877_s16, %s1217_s6  ;;  %p884_p1 = scmp.lt.s32.totalorder %s882_s20, %s878_s17 }
  0x1d   : > { %295 = vperm.xlu0 %859, %v281_v5   ;;  %408 = vperm.xlu1 %860, %v274_v6   ;;  %v423_v5 = vld [vmem:[%s1215_s4 + $0x20] sm:$0xff]  ;;  %v420_v6 = vld [vmem:[%s1215_s4 + $0x8] sm:$0xff]  ;;  %p880_p12 = pnand %p879_p11, %p1002_p5 }
  0x1e   : > { %p885_p2 = por %p884_p1, %p883_p0 }
  0x1f   : > { %403 = vperm.xlu2 %861, %v273_v7   ;;  %v305_v9 = vld.sshfl [vmem:[#allocation1] sm:$0xff pattern:$0x75316420]  ;;  %v306_v10 = vld.sshfl [vmem:[#allocation1 + $0x8] sm:$0xff pattern:$0x75316420]  ;;  %p881_p13 = pneg %p880_p12 }
  0x20   : > { %768 = vmatpush.msk.msra.mxu0 %vm320_vm0, %v305_v9  ;;  %773 = vmatpush.msk.msra.mxu1 %vm320_vm0, %v306_v10  ;;  %v424_v7 = vld [vmem:[%s1215_s4 + $0x28] sm:$0xff]  ;;  %v425_v9 = vld [vmem:[%s1215_s4 + $0x30] sm:$0xff]  ;;  %v422_v10 = vld [vmem:[%s1215_s4 + $0x18] sm:$0xff] }
  0x21   : > { %769 = vmatmul.msk.f32.vlgmr.msra.gmra.mxu0 %vm307_vm1, %v275_v8  ;;  %774 = vmatmul.msk.f32.vlgmr.msra.gmra.mxu1 %vm307_vm1, %v275_v8  ;;  %v421_v8 = vld [vmem:[%s1215_s4 + $0x10] sm:$0xff]  ;;  %p886_p3 = pnand %p885_p2, %p881_p13 }
  0x25   : > { %398 = vperm.xlu0 %859, %v272_v11   ;;  %393 = vperm.xlu1 %860, %v271_v12   ;;  %v426_v11 = vld [vmem:[%s1215_s4 + $0x38] sm:$0xff]  ;;  %v427_v12 = vld [vmem:[%s1215_s4 + $0x40] sm:$0xff] }
  0x27   : > { %445 = vperm.xlu2 %861, %v431_v13   ;;  %v428_v13 = vld [vmem:[%s1215_s4 + $0x48] sm:$0xff] }
  0x29   : > { %770 = vmatmul.msk.f32.gmra.mxu0 %vm307_vm1, %v276_v14  ;;  %775 = vmatmul.msk.f32.gmra.mxu1 %vm307_vm1, %v276_v14  ;;  %v429_v14 = vld [vmem:[%s1215_s4 + $0x50] sm:$0xff] }
  0x2d   : > { %450 = vperm.xlu0 %859, %v432_v15   ;;  %455 = vperm.xlu1 %860, %v433_v16   ;;  %v430_v15 = vld [vmem:[%s1215_s4 + $0x58] sm:$0xff] }
  0x2f   : > { %460 = vperm.xlu2 %861, %v434_v17  }
  0x31   : > { %771 = vmatmul.msk.f32.gmra.mxu0 %vm307_vm1, %v277_v18  ;;  %776 = vmatmul.msk.f32.gmra.mxu1 %vm307_vm1, %v277_v18 }
  0x35   : > { %465 = vperm.xlu0 %859, %v435_v19   ;;  %470 = vperm.xlu1 %860, %v436_v20  }
  0x37   : > { %475 = vperm.xlu2 %861, %v437_v21  }
  0x39   : > { %772 = vmatmul.msk.f32.gmra.mxu0 %vm307_vm1, %v278_v22  ;;  %777 = vmatmul.msk.f32.gmra.mxu1 %vm307_vm1, %v278_v22 }
  0x3d   : > { %480 = vperm.xlu0 %859, %v438_v23   ;;  %485 = vperm.xlu1 %860, %v439_v24  }
  0x3f   : > { %490 = vperm.xlu2 %861, %v440_v25  }
  0x45   : > { %495 = vperm.xlu0 %859, %v441_v26   ;;  %500 = vperm.xlu1 %860, %v442_v27  }
  0x71   : > { %v286_v36 = vpop.permute.xlu2 %285 }
  0x79   : > { %v404_v56 = vpop.permute.xlu2 %403 }
  0x81   : > { %v446_v17 = vpop.permute.xlu2 %445 }
  0x87   : > { %v301_v32 = vpop.permute.xlu0 %300  ;;  %v291_v33 = vpop.permute.xlu1 %290 }
  0x8f   : > { %v296_v37 = vpop.permute.xlu0 %295  ;;  %v409_v38 = vpop.permute.xlu1 %408 }
  0x97   : > { %v399_v60 = vpop.permute.xlu0 %398  ;;  %v394_v0 = vpop.permute.xlu1 %393 }
  0x9e   : > { %v342_v28 = vpop.f32.mrf.mxu0  ;;  %v371_v29 = vpop.f32.mrf.mxu1 }
  0x9f   : > { %v343_v47 = vadd.f32 %v342_v28, %v286_v36  ;;  %v372_v51 = vadd.f32 %v371_v29, %v286_v36  ;;  %v451_v16 = vpop.permute.xlu0 %450  ;;  %v456_v22 = vpop.permute.xlu1 %455 }
  0xa1   : > { %v383_v58 = vmax.f32 %v343_v47, 0.0  ;;  %v384_v61 = vmax.f32 %v372_v51, 0.0 }
  0xa3   : > { %v411_v2 = vadd.f32 %v394_v0, %v383_v58  ;;  %v412_v3 = vadd.f32 %v394_v0, %v384_v61 }
  0xa6   : > { %v345_v30 = vpop.f32.mrf.mxu0  ;;  %v374_v31 = vpop.f32.mrf.mxu1 }
  0xa7   : > { %v346_v43 = vadd.f32 %v345_v30, %v291_v33  ;;  %v375_v46 = vadd.f32 %v374_v31, %v291_v33  ;;  %v466_v23 = vpop.permute.xlu0 %465  ;;  %v471_v33 = vpop.permute.xlu1 %470 }
  0xa9   : > { %v385_v53 = vmax.f32 %v346_v43, 0.0  ;;  %v386_v57 = vmax.f32 %v375_v46, 0.0 }
  0xab   : > { %v413_v63 = vadd.f32 %v399_v60, %v385_v53  ;;  %v414_v1 = vadd.f32 %v399_v60, %v386_v57 }
  0xae   : > { %v348_v34 = vpop.f32.mrf.mxu0  ;;  %v377_v35 = vpop.f32.mrf.mxu1 }
  0xaf   : > { %v349_v39 = vadd.f32 %v348_v34, %v296_v37  ;;  %v378_v40 = vadd.f32 %v377_v35, %v296_v37  ;;  %v481_v51 = vpop.permute.xlu0 %480 }
  0xb1   : > { %v387_v48 = vmax.f32 %v349_v39, 0.0  ;;  %v388_v52 = vmax.f32 %v378_v40, 0.0 }
  0xb3   : > { %v415_v59 = vadd.f32 %v404_v56, %v387_v48  ;;  %v416_v62 = vadd.f32 %v404_v56, %v388_v52  ;;  %v486_v56 = vpop.permute.xlu1 %485 }
  0xb6   : > { %v351_v41 = vpop.f32.mrf.mxu0  ;;  %v380_v42 = vpop.f32.mrf.mxu1 }
  0xb7   : > { %v352_v44 = vadd.f32 %v351_v41, %v301_v32  ;;  %v381_v45 = vadd.f32 %v380_v42, %v301_v32  ;;  %v461_v32 = vpop.permute.xlu2 %460 }
  0xb9   : > { %v389_v49 = vmax.f32 %v352_v44, 0.0  ;;  %v390_v50 = vmax.f32 %v381_v45, 0.0 }
  0xbb   : > { %v417_v54 = vadd.f32 %v409_v38, %v389_v49  ;;  %v418_v55 = vadd.f32 %v409_v38, %v390_v50 }
  0xbd   : > { %552 = vmatpush.msrb.mxu0 %v417_v54  ;;  %807 = vmatpush.msra.mxu2 %v417_v54 }
  0xbe   : > { %605 = vmatpush.msrb.mxu1 %v418_v55  ;;  %811 = vmatpush.msra.mxu3 %v418_v55 }
  0xbf   : > { %553 = vmatpush.msrb.mxu0 %v415_v59  ;;  %808 = vmatpush.msra.mxu2 %v415_v59  ;;  %v476_v42 = vpop.permute.xlu2 %475 }
  0xc0   : > { %606 = vmatpush.msrb.mxu1 %v416_v62  ;;  %812 = vmatpush.msra.mxu3 %v416_v62 }
  0xc1   : > { %554 = vmatpush.msrb.mxu0 %v413_v63  ;;  %809 = vmatpush.msra.mxu2 %v413_v63 }
  0xc2   : > { %607 = vmatpush.msrb.mxu1 %v414_v1  ;;  %813 = vmatpush.msra.mxu3 %v414_v1 }
  0xc3   : > { %555 = vmatpush.msrb.mxu0 %v411_v2  ;;  %810 = vmatpush.msra.mxu2 %v411_v2  ;;  %v496_v2 = vpop.permute.xlu0 %495 }
  0xc4   : > { %608 = vmatpush.msrb.mxu1 %v412_v3  ;;  %814 = vmatpush.msra.mxu3 %v412_v3 }
  0xc5   : > { %778 = vmatmul.msk.f32.vlgmr.msrb.gmra.mxu0 %vm503_vm2, %v419_v4  ;;  %782 = vmatmul.msk.f32.vlgmr.msra.gmra.mxu2 %vm503_vm2, %v423_v5 }
  0xc6   : > { %790 = vmatmul.msk.f32.vlgmr.msrb.gmra.mxu1 %vm503_vm2, %v419_v4  ;;  %794 = vmatmul.msk.f32.vlgmr.msra.gmra.mxu3 %vm503_vm2, %v423_v5 }
  0xc7   : > { %v491_v61 = vpop.permute.xlu2 %490 }
  0xcd   : > { %779 = vmatmul.msk.f32.gmra.mxu0 %vm503_vm2, %v420_v6  ;;  %783 = vmatmul.msk.f32.gmra.mxu2 %vm503_vm2, %v424_v7 }
  0xce   : > { %791 = vmatmul.msk.f32.gmra.mxu1 %vm503_vm2, %v420_v6  ;;  %795 = vmatmul.msk.f32.gmra.mxu3 %vm503_vm2, %v424_v7  ;;  %v501_v7 = vpop.permute.xlu1 %500 }
  0xd5   : > { %780 = vmatmul.msk.f32.gmra.mxu0 %vm503_vm2, %v421_v8  ;;  %784 = vmatmul.msk.f32.gmra.mxu2 %vm503_vm2, %v425_v9 }
  0xd6   : > { %792 = vmatmul.msk.f32.gmra.mxu1 %vm503_vm2, %v421_v8  ;;  %796 = vmatmul.msk.f32.gmra.mxu3 %vm503_vm2, %v425_v9 }
  0xdd   : > { %781 = vmatmul.msk.f32.gmra.mxu0 %vm503_vm2, %v422_v10  ;;  %785 = vmatmul.msk.f32.gmra.mxu2 %vm503_vm2, %v426_v11 }
  0xde   : > { %793 = vmatmul.msk.f32.gmra.mxu1 %vm503_vm2, %v422_v10  ;;  %797 = vmatmul.msk.f32.gmra.mxu3 %vm503_vm2, %v426_v11 }
  0xe5   : > { %786 = vmatmul.msk.f32.gmra.mxu2 %vm503_vm2, %v427_v12 }
  0xe6   : > { %798 = vmatmul.msk.f32.gmra.mxu3 %vm503_vm2, %v427_v12 }
  0xed   : > { %787 = vmatmul.msk.f32.gmra.mxu2 %vm503_vm2, %v428_v13 }
  0xee   : > { %799 = vmatmul.msk.f32.gmra.mxu3 %vm503_vm2, %v428_v13 }
  0xf5   : > { %788 = vmatmul.msk.f32.gmra.mxu2 %vm503_vm2, %v429_v14 }
  0xf6   : > { %800 = vmatmul.msk.f32.gmra.mxu3 %vm503_vm2, %v429_v14 }
  0xfd   : > { %789 = vmatmul.msk.f32.gmra.mxu2 %vm503_vm2, %v430_v15 }
  0xfe   : > { %801 = vmatmul.msk.f32.gmra.mxu3 %vm503_vm2, %v430_v15 }
 0x142   : > { %v557_v18 = vpop.f32.mrf.mxu0 }
 0x143   : > { %v558_v19 = vadd.f32 %v557_v18, %v446_v17  ;;  %v610_v20 = vpop.f32.mrf.mxu1 }
 0x144   : > { %v611_v21 = vadd.f32 %v610_v20, %v446_v17 }
 0x145   : > { %646 = vst [vmem:[%s1151_s9] sm:$0xff] %v558_v19 }
 0x146   : > { %647 = vst [vmem:[%s1151_s9 + $0x8] sm:$0xff] %v611_v21 }
 0x148   : > { %v569_v24 = vpop.f32.mrf.mxu2 }
 0x149   : > { %v570_v25 = vadd.f32 %v569_v24, %v466_v23  ;;  %v622_v26 = vpop.f32.mrf.mxu3 }
 0x14a   : > { %v623_v27 = vadd.f32 %v622_v26, %v466_v23  ;;  %v560_v28 = vpop.f32.mrf.mxu0 }
 0x14b   : > { %654 = vst [vmem:[%s1151_s9 + $0x40] sm:$0xff] %v570_v25  ;;  %v561_v29 = vadd.f32 %v560_v28, %v451_v16  ;;  %v613_v30 = vpop.f32.mrf.mxu1 }
 0x14c   : > { %655 = vst [vmem:[%s1151_s9 + $0x48] sm:$0xff] %v623_v27  ;;  %v614_v31 = vadd.f32 %v613_v30, %v451_v16 }
 0x14d   : > { %648 = vst [vmem:[%s1151_s9 + $0x10] sm:$0xff] %v561_v29 }
 0x14e   : > { %649 = vst [vmem:[%s1151_s9 + $0x18] sm:$0xff] %v614_v31 }
 0x150   : > { %v572_v34 = vpop.f32.mrf.mxu2 }
 0x151   : > { %v573_v35 = vadd.f32 %v572_v34, %v471_v33  ;;  %v625_v36 = vpop.f32.mrf.mxu3 }
 0x152   : > { %v626_v37 = vadd.f32 %v625_v36, %v471_v33  ;;  %v563_v38 = vpop.f32.mrf.mxu0 }
 0x153   : > { %656 = vst [vmem:[%s1151_s9 + $0x50] sm:$0xff] %v573_v35  ;;  %v564_v39 = vadd.f32 %v563_v38, %v456_v22  ;;  %v616_v40 = vpop.f32.mrf.mxu1 }
 0x154   : > { %657 = vst [vmem:[%s1151_s9 + $0x58] sm:$0xff] %v626_v37  ;;  %v617_v41 = vadd.f32 %v616_v40, %v456_v22 }
 0x155   : > { %650 = vst [vmem:[%s1151_s9 + $0x20] sm:$0xff] %v564_v39 }
 0x156   : > { %651 = vst [vmem:[%s1151_s9 + $0x28] sm:$0xff] %v617_v41 }
 0x158   : > { %v575_v43 = vpop.f32.mrf.mxu2 }
 0x159   : > { %v576_v44 = vadd.f32 %v575_v43, %v476_v42  ;;  %v628_v45 = vpop.f32.mrf.mxu3 }
 0x15a   : > { %v629_v46 = vadd.f32 %v628_v45, %v476_v42  ;;  %v566_v47 = vpop.f32.mrf.mxu0 }
 0x15b   : > { %658 = vst [vmem:[%s1151_s9 + $0x60] sm:$0xff] %v576_v44  ;;  %v567_v48 = vadd.f32 %v566_v47, %v461_v32  ;;  %v619_v49 = vpop.f32.mrf.mxu1 }
 0x15c   : > { %659 = vst [vmem:[%s1151_s9 + $0x68] sm:$0xff] %v629_v46  ;;  %v620_v50 = vadd.f32 %v619_v49, %v461_v32 }
 0x15d   : > { %652 = vst [vmem:[%s1151_s9 + $0x30] sm:$0xff] %v567_v48 }
 0x15e   : > { %653 = vst [vmem:[%s1151_s9 + $0x38] sm:$0xff] %v620_v50 }
 0x160   : > { %v578_v52 = vpop.f32.mrf.mxu2 }
 0x161   : > { %v579_v53 = vadd.f32 %v578_v52, %v481_v51  ;;  %v631_v54 = vpop.f32.mrf.mxu3 }
 0x162   : > { %v632_v55 = vadd.f32 %v631_v54, %v481_v51 }
 0x163   : > { %660 = vst [vmem:[%s1151_s9 + $0x70] sm:$0xff] %v579_v53 }
 0x164   : > { %661 = vst [vmem:[%s1151_s9 + $0x78] sm:$0xff] %v632_v55 }
 0x168   : > { %v581_v57 = vpop.f32.mrf.mxu2 }
 0x169   : > { %v582_v58 = vadd.f32 %v581_v57, %v486_v56  ;;  %v634_v59 = vpop.f32.mrf.mxu3 }
 0x16a   : > { %v635_v60 = vadd.f32 %v634_v59, %v486_v56 }
 0x16b   : > { %662 = vst [vmem:[%s1151_s9 + $0x80] sm:$0xff] %v582_v58 }
 0x16c   : > { %663 = vst [vmem:[%s1151_s9 + $0x88] sm:$0xff] %v635_v60 }
 0x170   : > { %v584_v62 = vpop.f32.mrf.mxu2 }
 0x171   : > { %v585_v63 = vadd.f32 %v584_v62, %v491_v61  ;;  %v637_v0 = vpop.f32.mrf.mxu3 }
 0x172   : > { %v638_v1 = vadd.f32 %v637_v0, %v491_v61 }
 0x173   : > { %664 = vst [vmem:[%s1151_s9 + $0x90] sm:$0xff] %v585_v63 }
 0x174   : > { %665 = vst [vmem:[%s1151_s9 + $0x98] sm:$0xff] %v638_v1 }
 0x178   : > { %v587_v3 = vpop.f32.mrf.mxu2 }
 0x179   : > { %v588_v4 = vadd.f32 %v587_v3, %v496_v2  ;;  %v640_v5 = vpop.f32.mrf.mxu3 }
 0x17a   : > { %v641_v6 = vadd.f32 %v640_v5, %v496_v2 }
 0x17b   : > { %666 = vst [vmem:[%s1151_s9 + $0xa0] sm:$0xff] %v588_v4 }
 0x17c   : > { %667 = vst [vmem:[%s1151_s9 + $0xa8] sm:$0xff] %v641_v6 }
 0x180   : > { %v590_v8 = vpop.f32.mrf.mxu2 }
 0x181   : > { %v591_v9 = vadd.f32 %v590_v8, %v501_v7  ;;  %v643_v10 = vpop.f32.mrf.mxu3 }
 0x182   : > { %v644_v11 = vadd.f32 %v643_v10, %v501_v7 }
 0x183   : > { %668 = vst [vmem:[%s1151_s9 + $0xb0] sm:$0xff] %v591_v9 }
 0x184   : > { %669 = vst [vmem:[%s1151_s9 + $0xb8] sm:$0xff] %v644_v11 }
 0x185   : > { %889 = shalt.err (!%p886_p3)
}
 0x186   : > { %s927_s28 = smov 256   ;;  %s928_s9 = smov 16  }
 0x187   : > { %817 = dma.vmem_to_hbm [thread:$0]  (%p1002_p5), %s684_s14, 3072, %s686_s15, %s671_s25, %s927_s28, %s927_s28, %s928_s9  }
 0x188 PF: > { %p823_p4 = scmp.ge.s32.totalorder %s924_s24, 2  ;;  %s700_s10 = sand.u32 1, %s912_s21  }
 0x189   : > { %s701_s11 = scalar_lea.sflag [#allocation3], %s700_s10 }
 0x18a   : > { %p820_p7 = pnand %p823_p4, %p1006_p6 }
 0x18c   : > { %p821_p8 = pneg %p820_p7 }
 0x18e   : > { %907 = dma.done.wait (%p821_p8), %s701_s11, 3072  }
 0x18f   : > { %909 = vsyncadd (%p821_p8), %s701_s11, 4294964224  ;;  %p16_p9 = scmp.ge.s32.totalorder %s989_s27, 6   ;;  %s1220_s21 = smov %s916_s22 }
 0x190   : > { %s1221_s22 = smov %s920_s23  ;;  %s1222_s23 = smov %s1000_s30 }
 0x191   : > { %s1223_s24 = smov %s989_s27  ;;  %18 = sbr.rel (!%p16_p9) target bundleno = 3 (0x3), region = 82 }
 0x196   :  { %707 = vsyncpa [#allocation3], 1 }
 0x197   :  { %709 = vsyncpa [#allocation3 + $0x1], 1 }

</bundles_post_ra>
